<compile_context>
chip_gen: v7x
topology: tpu7x:2x2x1
jax: 0.10.0
libtpu: 0.0.40
codegen_flags: <defaults>
</compile_context>

<pallas_src>
import functools

import jax
import jax.numpy as jnp
from jax import lax
from jax.experimental import pallas as pl
from jax.experimental.pallas import tpu as pltpu


def _win(start, size, stride):
    """Static window along one ref dim; plain slice when stride == 1."""
    if stride == 1:
        return pl.ds(start, size)
    return pl.ds(start, size, stride=stride)


def _encoder_kernel(x_ref, dw_ref, pw_ref, b1_ref, b2_ref, out_ref, xp_ref,
                    *, H, W, Ho, Wo, C, OC, s):
    # x_ref : (1, H, W, C)     one image, channels-last (channels on lanes)
    # dw_ref: (9, 1, C)        depthwise 3x3 weights with BN1 scale folded in
    # pw_ref: (OC, C)          pointwise 1x1 weights with BN2 scale folded in
    # b1_ref: (1, C)           folded BN1 shift
    # b2_ref: (OC, 1)          folded BN2 shift
    # out_ref: (1, OC, Ho*Wo)  channel-major output (NCHW with flattened spatial)
    # xp_ref: (H+2, W+2, C)    VMEM scratch: zero-padded copy of the image

    # In-kernel zero padding (pad=1) — no padded HBM copy in the wrapper.
    xp_ref[...] = jnp.zeros((H + 2, W + 2, C), jnp.float32)
    xp_ref[1:H + 1, 1:W + 1, :] = x_ref[0].astype(jnp.float32)

    # Depthwise 3x3 conv, evaluated only at the positions the strided 1x1 conv samples
    # (valid because BN1/ReLU are pointwise). 9 strided tap reads: strides live on the
    # leading (H) and sublane (W) dims; the lane dim (C) is read densely.
    # acc is initialized from the folded BN1 bias (saves one add per element).
    acc = jnp.broadcast_to(b1_ref[...], (Ho, Wo, C))
    for t in range(9):  # fully unrolled: 9 VPU multiply-accumulates
        ki, kj = t // 3, t % 3
        tap = xp_ref[_win(ki, Ho, s), _win(kj, Wo, s), :]
        acc = acc + tap * dw_ref[t]        # dw_ref[t] is (1, C), broadcast over (Ho, Wo, C)
    y = jnp.maximum(acc, 0.0)              # BN1 already folded into dw/b1; ReLU

    # Strided 1x1 conv + BN2 as an NT matmul on the MXU:
    #   (OC, C) contracted with (Ho*Wo, C) over C  ->  (OC, Ho*Wo)
    # The result is already channel-major, so the store is lane-dense over Ho*Wo and the
    # kernel emits NCHW directly (no output transpose anywhere).
    y2 = y.reshape(Ho * Wo, C)
    z = lax.dot_general(pw_ref[...], y2,
                        dimension_numbers=(((1,), (1,)), ((), ())),
                        preferred_element_type=jnp.float32)
    z = jnp.maximum(z + b2_ref[...], 0.0)  # folded BN2 bias; ReLU
    out_ref[0] = z.astype(out_ref.dtype)


def depthwise_encoder_layer(x_nchw, params, preserve_size: bool = False):
    """Forward pass of DepthwiseEncoderLayer (inference-mode BatchNorm)."""
    (w_dw, g1, be1, m1, v1, w_pw, g2, be2, m2, v2) = params
    N, C, H, W = x_nchw.shape
    OC = w_pw.shape[0]
    if preserve_size:
        s = 1
    else:
        assert OC >= C and OC % C == 0, (
            f"out_channels ({OC}) must be a positive multiple of in_channels ({C}) "
            "when preserve_size=False")
        s = OC // C
    eps = 1e-5
    Ho = (H - 1) // s + 1
    Wo = (W - 1) // s + 1

    # ---- parameter prep: fold inference-mode BN into the conv weights ---------------
    inv1 = g1 / jnp.sqrt(v1 + eps)
    inv2 = g2 / jnp.sqrt(v2 + eps)
    # depthwise weight (C,1,3,3) -> (9, 1, C), scaled by BN1
    dwf = (jnp.transpose(w_dw.reshape(C, 9), (1, 0)) * inv1[None, :]).reshape(9, 1, C)
    b1 = (be1 - m1 * inv1).reshape(1, C)
    # pointwise weight (OC,C,1,1) -> (OC, C), scaled per output channel by BN2
    pwf = w_pw.reshape(OC, C) * inv2[:, None]
    b2 = (be2 - m2 * inv2).reshape(OC, 1)

    # Channels-last for the kernel: the strided taps must stride H/W, which therefore
    # cannot live on the lane (last) axis. Single remaining layout op on the input.
    x = jnp.transpose(x_nchw, (0, 2, 3, 1)).astype(jnp.float32)

    kernel = functools.partial(_encoder_kernel,
                               H=H, W=W, Ho=Ho, Wo=Wo, C=C, OC=OC, s=s)

    flops = 2 * N * Ho * Wo * C * (9 + OC)
    bytes_accessed = 4 * (N * H * W * C + N * OC * Ho * Wo + 9 * C + OC * C + C + OC)

    out = pl.pallas_call(
        kernel,
        out_shape=jax.ShapeDtypeStruct((N, OC, Ho * Wo), jnp.float32),
        grid=(N,),
        in_specs=[
            pl.BlockSpec((1, H, W, C), lambda n: (n, 0, 0, 0)),   # one image
            pl.BlockSpec((9, 1, C), lambda n: (0, 0, 0)),         # folded dw weights
            pl.BlockSpec((OC, C), lambda n: (0, 0)),              # folded pw weights
            pl.BlockSpec((1, C), lambda n: (0, 0)),               # folded BN1 shift
            pl.BlockSpec((OC, 1), lambda n: (0, 0)),              # folded BN2 shift
        ],
        out_specs=pl.BlockSpec((1, OC, Ho * Wo), lambda n: (n, 0, 0)),
        scratch_shapes=[pltpu.VMEM((H + 2, W + 2, C), jnp.float32)],
        compiler_params=pltpu.CompilerParams(dimension_semantics=("parallel",)),
        cost_estimate=pl.CostEstimate(flops=flops, transcendentals=0,
                                      bytes_accessed=bytes_accessed),
    )(x, dwf, pwf, b1, b2)

    # (N, OC, Ho*Wo) -> (N, OC, Ho, Wo): contiguous reshape, no HBM traffic.
    return out.reshape(N, OC, Ho, Wo)


def reference_forward(x_nchw, params, preserve_size: bool = False):
    """Pure-JAX reference (lax convs), same inference-mode BN semantics."""
    (w_dw, g1, be1, m1, v1, w_pw, g2, be2, m2, v2) = params
    N, C, H, W = x_nchw.shape
    OC = w_pw.shape[0]
    s = 1 if preserve_size else OC // C
    eps = 1e-5
    x = jnp.transpose(x_nchw, (0, 2, 3, 1))
    dw_hwio = jnp.transpose(w_dw.reshape(C, 3, 3), (1, 2, 0))[:, :, None, :]   # (3,3,1,C)
    y = lax.conv_general_dilated(x, dw_hwio, (1, 1), ((1, 1), (1, 1)),
                                 dimension_numbers=("NHWC", "HWIO", "NHWC"),
                                 feature_group_count=C)
    inv1 = g1 / jnp.sqrt(v1 + eps)
    y = jnp.maximum(y * inv1 + (be1 - m1 * inv1), 0.0)
    pw_hwio = jnp.transpose(w_pw.reshape(OC, C), (1, 0))[None, None]           # (1,1,C,OC)
    z = lax.conv_general_dilated(y, pw_hwio, (s, s), "VALID",
                                 dimension_numbers=("NHWC", "HWIO", "NHWC"))
    inv2 = g2 / jnp.sqrt(v2 + eps)
    z = jnp.maximum(z * inv2 + (be2 - m2 * inv2), 0.0)
    return jnp.transpose(z, (0, 3, 1, 2))


if __name__ == "__main__":
    key = jax.random.PRNGKey(0)
    ks = jax.random.split(key, 11)
    N, C, OC, H, W = 2, 4, 8, 16, 16     # stride = OC // C = 2

    x = jax.random.normal(ks[0], (N, C, H, W), jnp.float32)
    # nn.Conv2d(C, C, 3, groups=C, bias=False) weight: (C, 1, 3, 3)
    w_dw = 0.3 * jax.random.normal(ks[1], (C, 1, 3, 3), jnp.float32)
    # BatchNorm2d(C): gamma, beta, running_mean, running_var
    g1 = 1.0 + 0.1 * jax.random.normal(ks[2], (C,), jnp.float32)
    be1 = 0.1 * jax.random.normal(ks[3], (C,), jnp.float32)
    m1 = 0.1 * jax.random.normal(ks[4], (C,), jnp.float32)
    v1 = 0.5 + 0.5 * jnp.abs(jax.random.normal(ks[5], (C,), jnp.float32))
    # nn.Conv2d(C, OC, 1, stride=2, bias=False) weight: (OC, C, 1, 1)
    w_pw = 0.3 * jax.random.normal(ks[6], (OC, C, 1, 1), jnp.float32)
    # BatchNorm2d(OC)
    g2 = 1.0 + 0.1 * jax.random.normal(ks[7], (OC,), jnp.float32)
    be2 = 0.1 * jax.random.normal(ks[8], (OC,), jnp.float32)
    m2 = 0.1 * jax.random.normal(ks[9], (OC,), jnp.float32)
    v2 = 0.5 + 0.5 * jnp.abs(jax.random.normal(ks[10], (OC,), jnp.float32))

    params = (w_dw, g1, be1, m1, v1, w_pw, g2, be2, m2, v2)

    # strided path (preserve_size=False, stride 2)
    out = depthwise_encoder_layer(x, params, preserve_size=False)
    out = jax.block_until_ready(out)
    assert out.shape == (N, OC, H // 2, W // 2), out.shape
    ref = reference_forward(x, params, preserve_size=False)
    err = float(jnp.max(jnp.abs(out - ref)))
    assert err < 5e-4, f"max abs err (strided) = {err}"

    # preserve_size path (stride 1)
    out1 = depthwise_encoder_layer(x, params, preserve_size=True)
    out1 = jax.block_until_ready(out1)
    assert out1.shape == (N, OC, H, W), out1.shape
    ref1 = reference_forward(x, params, preserve_size=True)
    err1 = float(jnp.max(jnp.abs(out1 - ref1)))
    assert err1 < 5e-4, f"max abs err (preserve_size) = {err1}"

    print("KERNEL_OK")
</pallas_src>

<mosaic_0001>
module attributes {stable_mosaic.version = 11 : i64} {
  func.func @_encoder_kernel(%arg0: i32, %arg1: memref<1x16x16x4xf32, #tpu.memory_space<vmem>>, %arg2: memref<9x1x4xf32, #tpu.memory_space<vmem>>, %arg3: memref<8x4xf32, #tpu.memory_space<vmem>>, %arg4: memref<1x4xf32, #tpu.memory_space<vmem>>, %arg5: memref<8x1xf32, #tpu.memory_space<vmem>>, %arg6: memref<1x8x64xf32, #tpu.memory_space<vmem>>, %arg7: memref<18x18x4xf32, #tpu.memory_space<vmem>>) attributes {dimension_semantics = [#tpu.dimension_semantics<parallel>], iteration_bounds = array<i64: 2>, scalar_prefetch = 0 : i64, scratch_operands = 1 : i64, tpu.core_type = #tpu.core_type<tc>, window_params = [{transform_indices = @transform_0, window_bounds = array<i64: 1, 16, 16, 4>}, {pipeline_mode = #tpu.pipeline_mode<synchronous>, transform_indices = @transform_1, window_bounds = array<i64: 9, 1, 4>}, {pipeline_mode = #tpu.pipeline_mode<synchronous>, transform_indices = @transform_2, window_bounds = array<i64: 8, 4>}, {pipeline_mode = #tpu.pipeline_mode<synchronous>, transform_indices = @transform_3, window_bounds = array<i64: 1, 4>}, {pipeline_mode = #tpu.pipeline_mode<synchronous>, transform_indices = @transform_4, window_bounds = array<i64: 8, 1>}, {transform_indices = @transform_5, window_bounds = array<i64: 1, 8, 64>}]} {
    %cst = arith.constant 0.000000e+00 : f32
    %0 = vector.broadcast %cst : f32 to vector<18x18x4xf32>
    %c0 = arith.constant 0 : index
    %c0_0 = arith.constant 0 : index
    %c0_1 = arith.constant 0 : index
    %1 = vector.load %arg7[%c0, %c0_0, %c0_1] : memref<18x18x4xf32, #tpu.memory_space<vmem>>, vector<18x18x4xf32>
    tpu.vector_store %arg7[%c0, %c0_0, %c0_1], %0 {strides = array<i32>} : memref<18x18x4xf32, #tpu.memory_space<vmem>>, vector<18x18x4xf32>,
    %c0_2 = arith.constant 0 : index
    %c0_3 = arith.constant 0 : index
    %c0_4 = arith.constant 0 : index
    %c0_5 = arith.constant 0 : index
    %2 = vector.load %arg1[%c0_2, %c0_3, %c0_4, %c0_5] : memref<1x16x16x4xf32, #tpu.memory_space<vmem>>, vector<1x16x16x4xf32>
    %3 = vector.shape_cast %2 : vector<1x16x16x4xf32> to vector<16x16x4xf32>
    %c1 = arith.constant 1 : index
    %c1_6 = arith.constant 1 : index
    %c0_7 = arith.constant 0 : index
    %4 = vector.load %arg7[%c1, %c1_6, %c0_7] : memref<18x18x4xf32, #tpu.memory_space<vmem>>, vector<16x16x4xf32>
    tpu.vector_store %arg7[%c1, %c1_6, %c0_7], %3 {strides = array<i32>} : memref<18x18x4xf32, #tpu.memory_space<vmem>>, vector<16x16x4xf32>,
    %c0_8 = arith.constant 0 : index
    %c0_9 = arith.constant 0 : index
    %5 = vector.load %arg4[%c0_8, %c0_9] : memref<1x4xf32, #tpu.memory_space<vmem>>, vector<1x4xf32>
    %6 = vector.shape_cast %5 : vector<1x4xf32> to vector<1x1x4xf32>
    %7 = vector.broadcast %6 : vector<1x1x4xf32> to vector<8x8x4xf32>
    %c0_10 = arith.constant 0 : index
    %c0_11 = arith.constant 0 : index
    %c0_12 = arith.constant 0 : index
    %8 = tpu.strided_load %arg7[%c0_10, %c0_11, %c0_12] {strides = array<i32: 2, 2, 1>} : memref<18x18x4xf32, #tpu.memory_space<vmem>>, vector<8x8x4xf32>
    %c0_13 = arith.constant 0 : index
    %c0_14 = arith.constant 0 : index
    %c0_15 = arith.constant 0 : index
    %9 = vector.load %arg2[%c0_13, %c0_14, %c0_15] : memref<9x1x4xf32, #tpu.memory_space<vmem>>, vector<1x1x4xf32>
    %10 = vector.shape_cast %9 : vector<1x1x4xf32> to vector<1x4xf32>
    %11 = vector.shape_cast %10 : vector<1x4xf32> to vector<1x1x4xf32>
    %12 = vector.broadcast %11 : vector<1x1x4xf32> to vector<8x8x4xf32>
    %13 = arith.mulf %8, %12 : vector<8x8x4xf32>
    %14 = arith.addf %7, %13 : vector<8x8x4xf32>
    %c0_16 = arith.constant 0 : index
    %c1_17 = arith.constant 1 : index
    %c0_18 = arith.constant 0 : index
    %15 = tpu.strided_load %arg7[%c0_16, %c1_17, %c0_18] {strides = array<i32: 2, 2, 1>} : memref<18x18x4xf32, #tpu.memory_space<vmem>>, vector<8x8x4xf32>
    %c1_19 = arith.constant 1 : index
    %c0_20 = arith.constant 0 : index
    %c0_21 = arith.constant 0 : index
    %16 = vector.load %arg2[%c1_19, %c0_20, %c0_21] : memref<9x1x4xf32, #tpu.memory_space<vmem>>, vector<1x1x4xf32>
    %17 = vector.shape_cast %16 : vector<1x1x4xf32> to vector<1x4xf32>
    %18 = vector.shape_cast %17 : vector<1x4xf32> to vector<1x1x4xf32>
    %19 = vector.broadcast %18 : vector<1x1x4xf32> to vector<8x8x4xf32>
    %20 = arith.mulf %15, %19 : vector<8x8x4xf32>
    %21 = arith.addf %14, %20 : vector<8x8x4xf32>
    %c0_22 = arith.constant 0 : index
    %c2 = arith.constant 2 : index
    %c0_23 = arith.constant 0 : index
    %22 = tpu.strided_load %arg7[%c0_22, %c2, %c0_23] {strides = array<i32: 2, 2, 1>} : memref<18x18x4xf32, #tpu.memory_space<vmem>>, vector<8x8x4xf32>
    %c2_24 = arith.constant 2 : index
    %c0_25 = arith.constant 0 : index
    %c0_26 = arith.constant 0 : index
    %23 = vector.load %arg2[%c2_24, %c0_25, %c0_26] : memref<9x1x4xf32, #tpu.memory_space<vmem>>, vector<1x1x4xf32>
    %24 = vector.shape_cast %23 : vector<1x1x4xf32> to vector<1x4xf32>
    %25 = vector.shape_cast %24 : vector<1x4xf32> to vector<1x1x4xf32>
    %26 = vector.broadcast %25 : vector<1x1x4xf32> to vector<8x8x4xf32>
    %27 = arith.mulf %22, %26 : vector<8x8x4xf32>
    %28 = arith.addf %21, %27 : vector<8x8x4xf32>
    %c1_27 = arith.constant 1 : index
    %c0_28 = arith.constant 0 : index
    %c0_29 = arith.constant 0 : index
    %29 = tpu.strided_load %arg7[%c1_27, %c0_28, %c0_29] {strides = array<i32: 2, 2, 1>} : memref<18x18x4xf32, #tpu.memory_space<vmem>>, vector<8x8x4xf32>
    %c3 = arith.constant 3 : index
    %c0_30 = arith.constant 0 : index
    %c0_31 = arith.constant 0 : index
    %30 = vector.load %arg2[%c3, %c0_30, %c0_31] : memref<9x1x4xf32, #tpu.memory_space<vmem>>, vector<1x1x4xf32>
    %31 = vector.shape_cast %30 : vector<1x1x4xf32> to vector<1x4xf32>
    %32 = vector.shape_cast %31 : vector<1x4xf32> to vector<1x1x4xf32>
    %33 = vector.broadcast %32 : vector<1x1x4xf32> to vector<8x8x4xf32>
    %34 = arith.mulf %29, %33 : vector<8x8x4xf32>
    %35 = arith.addf %28, %34 : vector<8x8x4xf32>
    %c1_32 = arith.constant 1 : index
    %c1_33 = arith.constant 1 : index
    %c0_34 = arith.constant 0 : index
    %36 = tpu.strided_load %arg7[%c1_32, %c1_33, %c0_34] {strides = array<i32: 2, 2, 1>} : memref<18x18x4xf32, #tpu.memory_space<vmem>>, vector<8x8x4xf32>
    %c4 = arith.constant 4 : index
    %c0_35 = arith.constant 0 : index
    %c0_36 = arith.constant 0 : index
    %37 = vector.load %arg2[%c4, %c0_35, %c0_36] : memref<9x1x4xf32, #tpu.memory_space<vmem>>, vector<1x1x4xf32>
    %38 = vector.shape_cast %37 : vector<1x1x4xf32> to vector<1x4xf32>
    %39 = vector.shape_cast %38 : vector<1x4xf32> to vector<1x1x4xf32>
    %40 = vector.broadcast %39 : vector<1x1x4xf32> to vector<8x8x4xf32>
    %41 = arith.mulf %36, %40 : vector<8x8x4xf32>
    %42 = arith.addf %35, %41 : vector<8x8x4xf32>
    %c1_37 = arith.constant 1 : index
    %c2_38 = arith.constant 2 : index
    %c0_39 = arith.constant 0 : index
    %43 = tpu.strided_load %arg7[%c1_37, %c2_38, %c0_39] {strides = array<i32: 2, 2, 1>} : memref<18x18x4xf32, #tpu.memory_space<vmem>>, vector<8x8x4xf32>
    %c5 = arith.constant 5 : index
    %c0_40 = arith.constant 0 : index
    %c0_41 = arith.constant 0 : index
    %44 = vector.load %arg2[%c5, %c0_40, %c0_41] : memref<9x1x4xf32, #tpu.memory_space<vmem>>, vector<1x1x4xf32>
    %45 = vector.shape_cast %44 : vector<1x1x4xf32> to vector<1x4xf32>
    %46 = vector.shape_cast %45 : vector<1x4xf32> to vector<1x1x4xf32>
    %47 = vector.broadcast %46 : vector<1x1x4xf32> to vector<8x8x4xf32>
    %48 = arith.mulf %43, %47 : vector<8x8x4xf32>
    %49 = arith.addf %42, %48 : vector<8x8x4xf32>
    %c2_42 = arith.constant 2 : index
    %c0_43 = arith.constant 0 : index
    %c0_44 = arith.constant 0 : index
    %50 = tpu.strided_load %arg7[%c2_42, %c0_43, %c0_44] {strides = array<i32: 2, 2, 1>} : memref<18x18x4xf32, #tpu.memory_space<vmem>>, vector<8x8x4xf32>
    %c6 = arith.constant 6 : index
    %c0_45 = arith.constant 0 : index
    %c0_46 = arith.constant 0 : index
    %51 = vector.load %arg2[%c6, %c0_45, %c0_46] : memref<9x1x4xf32, #tpu.memory_space<vmem>>, vector<1x1x4xf32>
    %52 = vector.shape_cast %51 : vector<1x1x4xf32> to vector<1x4xf32>
    %53 = vector.shape_cast %52 : vector<1x4xf32> to vector<1x1x4xf32>
    %54 = vector.broadcast %53 : vector<1x1x4xf32> to vector<8x8x4xf32>
    %55 = arith.mulf %50, %54 : vector<8x8x4xf32>
    %56 = arith.addf %49, %55 : vector<8x8x4xf32>
    %c2_47 = arith.constant 2 : index
    %c1_48 = arith.constant 1 : index
    %c0_49 = arith.constant 0 : index
    %57 = tpu.strided_load %arg7[%c2_47, %c1_48, %c0_49] {strides = array<i32: 2, 2, 1>} : memref<18x18x4xf32, #tpu.memory_space<vmem>>, vector<8x8x4xf32>
    %c7 = arith.constant 7 : index
    %c0_50 = arith.constant 0 : index
    %c0_51 = arith.constant 0 : index
    %58 = vector.load %arg2[%c7, %c0_50, %c0_51] : memref<9x1x4xf32, #tpu.memory_space<vmem>>, vector<1x1x4xf32>
    %59 = vector.shape_cast %58 : vector<1x1x4xf32> to vector<1x4xf32>
    %60 = vector.shape_cast %59 : vector<1x4xf32> to vector<1x1x4xf32>
    %61 = vector.broadcast %60 : vector<1x1x4xf32> to vector<8x8x4xf32>
    %62 = arith.mulf %57, %61 : vector<8x8x4xf32>
    %63 = arith.addf %56, %62 : vector<8x8x4xf32>
    %c2_52 = arith.constant 2 : index
    %c2_53 = arith.constant 2 : index
    %c0_54 = arith.constant 0 : index
    %64 = tpu.strided_load %arg7[%c2_52, %c2_53, %c0_54] {strides = array<i32: 2, 2, 1>} : memref<18x18x4xf32, #tpu.memory_space<vmem>>, vector<8x8x4xf32>
    %c8 = arith.constant 8 : index
    %c0_55 = arith.constant 0 : index
    %c0_56 = arith.constant 0 : index
    %65 = vector.load %arg2[%c8, %c0_55, %c0_56] : memref<9x1x4xf32, #tpu.memory_space<vmem>>, vector<1x1x4xf32>
    %66 = vector.shape_cast %65 : vector<1x1x4xf32> to vector<1x4xf32>
    %67 = vector.shape_cast %66 : vector<1x4xf32> to vector<1x1x4xf32>
    %68 = vector.broadcast %67 : vector<1x1x4xf32> to vector<8x8x4xf32>
    %69 = arith.mulf %64, %68 : vector<8x8x4xf32>
    %70 = arith.addf %63, %69 : vector<8x8x4xf32>
    %cst_57 = arith.constant 0.000000e+00 : f32
    %71 = vector.broadcast %cst_57 : f32 to vector<8x8x4xf32>
    %72 = arith.maximumf %70, %71 : vector<8x8x4xf32>
    %73 = vector.shape_cast %72 : vector<8x8x4xf32> to vector<64x4xf32>
    %c0_58 = arith.constant 0 : index
    %c0_59 = arith.constant 0 : index
    %74 = vector.load %arg3[%c0_58, %c0_59] : memref<8x4xf32, #tpu.memory_space<vmem>>, vector<8x4xf32>
    %cst_60 = arith.constant dense<0.000000e+00> : vector<8x64xf32>
    %75 = tpu.matmul %74, %73, %cst_60 {dimension_numbers = #tpu.dot_dimension_numbers<[1], [1], [0], [0], [0, 0, 1, 0], [], []>} : vector<8x4xf32>, vector<64x4xf32>, vector<8x64xf32> -> vector<8x64xf32>
    %c0_61 = arith.constant 0 : index
    %c0_62 = arith.constant 0 : index
    %76 = vector.load %arg5[%c0_61, %c0_62] : memref<8x1xf32, #tpu.memory_space<vmem>>, vector<8x1xf32>
    %77 = vector.broadcast %76 : vector<8x1xf32> to vector<8x64xf32>
    %78 = arith.addf %75, %77 : vector<8x64xf32>
    %cst_63 = arith.constant 0.000000e+00 : f32
    %79 = vector.broadcast %cst_63 : f32 to vector<8x64xf32>
    %80 = arith.maximumf %78, %79 : vector<8x64xf32>
    %c0_64 = arith.constant 0 : index
    %c0_65 = arith.constant 0 : index
    %c0_66 = arith.constant 0 : index
    %81 = vector.load %arg6[%c0_64, %c0_65, %c0_66] : memref<1x8x64xf32, #tpu.memory_space<vmem>>, vector<1x8x64xf32>
    %82 = vector.shape_cast %81 : vector<1x8x64xf32> to vector<8x64xf32>
    %83 = vector.shape_cast %80 : vector<8x64xf32> to vector<1x8x64xf32>
    tpu.vector_store %arg6[%c0_64, %c0_65, %c0_66], %83 {strides = array<i32>} : memref<1x8x64xf32, #tpu.memory_space<vmem>>, vector<1x8x64xf32>,
    return
  }
  func.func @transform_0(%arg0: i32) -> (i32, i32, i32, i32) {
    %c0_i32 = arith.constant 0 : i32
    %c0_i32_0 = arith.constant 0 : i32
    %c0_i32_1 = arith.constant 0 : i32
    %c0_i32_2 = arith.constant 0 : i32
    return %arg0, %c0_i32, %c0_i32_0, %c0_i32_1 : i32, i32, i32, i32
  }
  func.func @transform_1(%arg0: i32) -> (i32, i32, i32) {
    %c0_i32 = arith.constant 0 : i32
    %c0_i32_0 = arith.constant 0 : i32
    %c0_i32_1 = arith.constant 0 : i32
    %c0_i32_2 = arith.constant 0 : i32
    return %c0_i32, %c0_i32_0, %c0_i32_1 : i32, i32, i32
  }
  func.func @transform_2(%arg0: i32) -> (i32, i32) {
    %c0_i32 = arith.constant 0 : i32
    %c0_i32_0 = arith.constant 0 : i32
    %c0_i32_1 = arith.constant 0 : i32
    return %c0_i32, %c0_i32_0 : i32, i32
  }
  func.func @transform_3(%arg0: i32) -> (i32, i32) {
    %c0_i32 = arith.constant 0 : i32
    %c0_i32_0 = arith.constant 0 : i32
    %c0_i32_1 = arith.constant 0 : i32
    return %c0_i32, %c0_i32_0 : i32, i32
  }
  func.func @transform_4(%arg0: i32) -> (i32, i32) {
    %c0_i32 = arith.constant 0 : i32
    %c0_i32_0 = arith.constant 0 : i32
    %c0_i32_1 = arith.constant 0 : i32
    return %c0_i32, %c0_i32_0 : i32, i32
  }
  func.func @transform_5(%arg0: i32) -> (i32, i32, i32) {
    %c0_i32 = arith.constant 0 : i32
    %c0_i32_0 = arith.constant 0 : i32
    %c0_i32_1 = arith.constant 0 : i32
    return %arg0, %c0_i32, %c0_i32_0 : i32, i32, i32
  }
}

</mosaic_0001>

<bundles_post_ra>
// kernel: tpu_custom_call.1
= control target key start
LH: loop header
LB: loop body
LE: loop exit
PB: predicated region body
PF: predicated region fallthrough
CT: control target
= control target key end

     0   :  { %10 = vsyncpa [#allocation4], 0  ;;  %s1572_s0 = inlined_call_operand.vmem [shape: f32[2,16,16,4], index: 0, kind: input, shape index: {}]   ;;  %s1573_s1 = inlined_call_operand.vmem [shape: f32[9,1,4], index: 1, kind: input, shape index: {}]   ;;  %s1574_s2 = inlined_call_operand.vmem [shape: f32[8,4], index: 2, kind: input, shape index: {}]   ;;  %s1575_s3 = inlined_call_operand.vmem [shape: f32[1,4], index: 3, kind: input, shape index: {}]   ;;  %s1576_s4 = inlined_call_operand.vmem [shape: f32[8,1], index: 4, kind: input, shape index: {}]   ;;  %s1577_s5 = inlined_call_operand.hbm [shape: f32[2,8,64], index: 5, kind: output, shape index: {}]  }
   0x1   :  { %12 = vsyncpa [#allocation4 + $0x1], 0  ;;  %s1168_s18 = smov 0   ;;  %s1170_s19 = smov 0  }
   0x2   :  { %s1172_s20 = smov 0   ;;  %s1174_s21 = smov 0  }
   0x3 LB: > { %s1189_s22 = sadd.s32 4294967295, %s1131_s21   ;;  %s942_s23 = sadd.s32 4294967294, %s1131_s21   ;;  %s1131_s21 = sphi %s1174_s21, %s1585_s21   ;;  %s1127_s20 = sphi %s1172_s20, %s1584_s20   ;;  %s1123_s19 = sphi %s1170_s19, %s1583_s19   ;;  %s1119_s18 = sphi %s1168_s18, %s1582_s18  }
   0x4   : > { %s1193_s24 = sadd.s32 1, %s1131_s21   ;;  %s135_s25 = sadd.s32 1, %s1127_s20 }
   0x5   : > { %s132_s26 = ssub.s32 %s1131_s21, %s1193_s24  ;;  %p145_p0 = scmp.ne.s32.totalorder %s1127_s20, %s1123_s19 }
   0x6   : > { %p133_p1 = scmp.eq.s32.totalorder %s132_s26, 0  ;;  %p146_p2 = scmp.eq.s32.totalorder %s1189_s22, 1 }
   0x7   : > { %p151_p3 = scmp.ne.s32.totalorder %s1123_s19, %s1119_s18  ;;  %p152_p4 = scmp.eq.s32.totalorder %s942_s23, 1 }
   0x8   : > { %s1204_s27 = scalar_select %p133_p1, %s1127_s20, %s135_s25  }
   0x9   : > { %p1206_p5 = por %p146_p2, %p145_p0  ;;  %p1210_p6 = por %p152_p4, %p151_p3 }
   0xa   : > { %p945_p7 = scmp.ge.s32.totalorder %s1131_s21, 1  ;;  %p190_p8 = scmp.lt.s32.totalorder %s1131_s21, 3 }
   0xc   : > { %p191_p9 = pnand %p945_p7, %p190_p8 }
   0xd   : > { %p218_p10 = scmp.lt.s32.totalorder (!%p191_p9), %s1189_s22, 1  ;;  %vm223_vm0 = vcmask (!%p191_p9), 31744   ;;  %vm226_vm1 = vcmask (!%p191_p9), 25600   ;;  %v1133_v0 = vmov (!%p191_p9), 0.0|0.0   ;;  %v1134_v1 = vmov (!%p191_p9), 0.0   ;;  %v717_v5 = vld [vmem:[%s1576_s4] sm:$0xff] (!%p191_p9) }
   0xe   : > { %194 = sbr.rel (%p191_p9) target bundleno = 336 (0x150), region = 40  ;;  %1009 = vmatprep.subr.bf16.mxu0 (!%p191_p9), %v1133_v0  ;;  %224 = vst.msk [vmem:[#allocation2] sm:$0xff] (!%p191_p9), %vm223_vm0, %v1134_v1  ;;  %225 = vst.msk [vmem:[#allocation2 + $0x8] sm:$0xff] (!%p191_p9), %vm223_vm0, %v1134_v1  ;;  %vm1135_vm2 = vmmov (!%p191_p9), 0   ;;  %v1280_v2 = vld [vmem:[%s1573_s1] ss:$0 sm:$0xff] (!%p191_p9) }
   0xf   : > { %227 = vst.msk [vmem:[#allocation2 + $0x10] sm:$0x3] (!%p191_p9), %vm226_vm1, %v1134_v1  ;;  %230 = vst.msk [vmem:[#allocation2 + $0x28] sm:$0x3] (!%p191_p9), %vm226_vm1, %v1134_v1  ;;  %1006 = vmatprep.mubr.msk.f32.mxu0 (!%p191_p9), %vm1135_vm2, %v1134_v1  ;;  %v1285_v3 = vld [vmem:[%s1573_s1 + $0x1] ss:$0 sm:$0xff] (!%p191_p9) }
  0x10   : > { %228 = vst.msk [vmem:[#allocation2 + $0x18] sm:$0xff] (!%p191_p9), %vm223_vm0, %v1134_v1  ;;  %229 = vst.msk [vmem:[#allocation2 + $0x20] sm:$0xff] (!%p191_p9), %vm223_vm0, %v1134_v1  ;;  %v1136_v4 = vmov (!%p191_p9), 0   ;;  %v1296_v9 = vld [vmem:[%s1575_s3] ss:$0 sm:$0xff] (!%p191_p9)  ;;  %s215_s23 = sand.u32 (!%p191_p9), 1, %s1123_s19  }
  0x11   : > { %231 = vst.msk [vmem:[#allocation2 + $0x30] sm:$0xff] (!%p191_p9), %vm223_vm0, %v1134_v1  ;;  %232 = vst.msk [vmem:[#allocation2 + $0x38] sm:$0xff] (!%p191_p9), %vm223_vm0, %v1134_v1  ;;  %1068 = vset.pattern.permute.xlu0 (!%p191_p9), %v1136_v4  ;;  %v1301_v10 = vld [vmem:[%s1573_s1 + $0x2] ss:$0 sm:$0xff] (!%p191_p9)  ;;  %v1322_v22 = vld [vmem:[%s1573_s1 + $0x3] ss:$0 sm:$0xff] (!%p191_p9) }
  0x12   : > { %233 = vst.msk [vmem:[#allocation2 + $0x40] sm:$0x3] (!%p191_p9), %vm226_vm1, %v1134_v1  ;;  %236 = vst.msk [vmem:[#allocation2 + $0x58] sm:$0x3] (!%p191_p9), %vm226_vm1, %v1134_v1  ;;  %720 = vperm.xlu0 (!%p191_p9), %1068, %v717_v5   ;;  %v1327_v23 = vld [vmem:[%s1573_s1 + $0x4] ss:$0 sm:$0xff] (!%p191_p9) }
  0x13   : > { %234 = vst.msk [vmem:[#allocation2 + $0x48] sm:$0xff] (!%p191_p9), %vm223_vm0, %v1134_v1  ;;  %235 = vst.msk [vmem:[#allocation2 + $0x50] sm:$0xff] (!%p191_p9), %vm223_vm0, %v1134_v1  ;;  %v1338_v29 = vld [vmem:[%s1573_s1 + $0x5] ss:$0 sm:$0xff] (!%p191_p9)  ;;  %v1355_v37 = vld [vmem:[%s1573_s1 + $0x6] ss:$0 sm:$0xff] (!%p191_p9) }
  0x14   : > { %237 = vst.msk [vmem:[#allocation2 + $0x60] sm:$0xff] (!%p191_p9), %vm223_vm0, %v1134_v1  ;;  %238 = vst.msk [vmem:[#allocation2 + $0x68] sm:$0xff] (!%p191_p9), %vm223_vm0, %v1134_v1  ;;  %v1366_v44 = vld [vmem:[%s1573_s1 + $0x7] ss:$0 sm:$0xff] (!%p191_p9)  ;;  %v1371_v45 = vld [vmem:[%s1573_s1 + $0x8] ss:$0 sm:$0xff] (!%p191_p9) }
  0x15   : > { %239 = vst.msk [vmem:[#allocation2 + $0x70] sm:$0x3] %vm226_vm1, %v1134_v1  ;;  %242 = vst.msk [vmem:[#allocation2 + $0x88] sm:$0x3] %vm226_vm1, %v1134_v1  ;;  %s219_s30 = scalar_select %p218_p10, %s1189_s22, 1  ;;  %vm821_vm4 = vcmask 523264  }
  0x16   : > { %240 = vst.msk [vmem:[#allocation2 + $0x78] sm:$0xff] %vm223_vm0, %v1134_v1  ;;  %241 = vst.msk [vmem:[#allocation2 + $0x80] sm:$0xff] %vm223_vm0, %v1134_v1  ;;  %v351_v16 = vld [vmem:[#allocation2] ss:$2 sm:$0xff]  ;;  %v390_v18 = vld [vmem:[#allocation2 + $0x1] ss:$2 sm:$0xff] }
  0x17   : > { %243 = vst.msk [vmem:[#allocation2 + $0x90] sm:$0xff] %vm223_vm0, %v1134_v1  ;;  %244 = vst.msk [vmem:[#allocation2 + $0x98] sm:$0xff] %vm223_vm0, %v1134_v1  ;;  %s980_s6 = sshll.u32 %s219_s30, 8  ;;  %v373_v17 = vmul.f32 %v1280_v2, %v351_v16  ;;  %v430_v19 = vld [vmem:[#allocation2 + $0x2] ss:$2 sm:$0xff]  ;;  %v413_v21 = vmul.f32 %v1285_v3, %v390_v18  ;;  %s946_s25 = sshll.u32 %s215_s23, 3 }
  0x18   : > { %245 = vst.msk [vmem:[#allocation2 + $0xa0] sm:$0x3] %vm226_vm1, %v1134_v1  ;;  %248 = vst.msk [vmem:[#allocation2 + $0xb8] sm:$0x3] %vm226_vm1, %v1134_v1  ;;  %s1275_s9 = scalar_lea.vmem %s1572_s0, %s980_s6  ;;  %v453_v28 = vmul.f32 %v1301_v10, %v430_v19  ;;  %s977_s26 = sshll.u32 %s1189_s22, 7 }
  0x19   : > { %246 = vst.msk [vmem:[#allocation2 + $0xa8] sm:$0xff] %vm223_vm0, %v1134_v1  ;;  %247 = vst.msk [vmem:[#allocation2 + $0xb0] sm:$0xff] %vm223_vm0, %v1134_v1  ;;  %v279_v6 = vld [vmem:[%s1275_s9] sm:$0xff]  ;;  %v280_v7 = vld [vmem:[%s1275_s9 + $0x8] sm:$0xff]  ;;  %v381_v27 = vadd.f32 %v1296_v9, %v373_v17  ;;  %s217_s30 = scalar_lea.vmem [#allocation3], %s946_s25  ;;  %s1530_s10 = scalar_lea.hbm %s1577_s5, %s977_s26 }
  0x1a   : > { %249 = vst.msk [vmem:[#allocation2 + $0xc0] sm:$0xff] %vm223_vm0, %v1134_v1  ;;  %250 = vst.msk [vmem:[#allocation2 + $0xc8] sm:$0xff] %vm223_vm0, %v1134_v1  ;;  %v281_v8 = vld [vmem:[%s1275_s9 + $0x10] sm:$0xff]  ;;  %v282_v11 = vld [vmem:[%s1275_s9 + $0x18] sm:$0xff]  ;;  %s837_s6 = sshll.u32 %s217_s30, 4  ;;  %s824_s11 = scalar_lea.sflag [#allocation4], %s215_s23  ;;  %s1532_s6 = int_to_ptr.vmem [resolvable:$true] %s837_s6 }
  0x1b   : > { %251 = vst.msk [vmem:[#allocation2 + $0xd0] sm:$0x3] %vm226_vm1, %v1134_v1  ;;  %254 = vst.msk [vmem:[#allocation2 + $0xe8] sm:$0x3] %vm226_vm1, %v1134_v1  ;;  %v283_v12 = vld [vmem:[%s1275_s9 + $0x20] sm:$0xff]  ;;  %v284_v13 = vld [vmem:[%s1275_s9 + $0x28] sm:$0xff]  ;;  %v421_v36 = vadd.f32 %v413_v21, %v381_v27 }
  0x1c   : > { %252 = vst.msk [vmem:[#allocation2 + $0xd8] sm:$0xff] %vm223_vm0, %v1134_v1  ;;  %253 = vst.msk [vmem:[#allocation2 + $0xe0] sm:$0xff] %vm223_vm0, %v1134_v1  ;;  %v285_v14 = vld [vmem:[%s1275_s9 + $0x30] sm:$0xff]  ;;  %v286_v15 = vld [vmem:[%s1275_s9 + $0x38] sm:$0xff]  ;;  %s1069_s12 = scalar_lea.vmem %s1532_s6, 128  ;;  %s1137_s22 = smov [#allocation3]  }
  0x1d   : > { %255 = vst.msk [vmem:[#allocation2 + $0xf0] sm:$0xff] %vm223_vm0, %v1134_v1  ;;  %256 = vst.msk [vmem:[#allocation2 + $0xf8] sm:$0xff] %vm223_vm0, %v1134_v1  ;;  %v287_v20 = vld [vmem:[%s1275_s9 + $0x40] sm:$0xff]  ;;  %v288_v24 = vld [vmem:[%s1275_s9 + $0x48] sm:$0xff]  ;;  %v461_v49 = vadd.f32 %v453_v28, %v421_v36  ;;  %p1070_p11 = scmp.ne.s32.totalorder %s1532_s6, %s1069_s12  ;;  %s1073_s13 = sshll.u32 %s1137_s22, 4  ;;  %s1074_s13 = int_to_ptr.vmem [resolvable:$false] %s1073_s13 }
  0x1e   : > { %257 = vst.msk [vmem:[#allocation2 + $0x100] sm:$0x3] %vm226_vm1, %v1134_v1  ;;  %260 = vst.msk [vmem:[#allocation2 + $0x118] sm:$0x3] %vm226_vm1, %v1134_v1  ;;  %v289_v25 = vld [vmem:[%s1275_s9 + $0x50] sm:$0xff]  ;;  %v290_v26 = vld [vmem:[%s1275_s9 + $0x58] sm:$0xff]  ;;  %p1076_p0 = scmp.lt.s32.totalorder %s1532_s6, %s1074_s13 }
  0x1f   : > { %258 = vst.msk [vmem:[#allocation2 + $0x108] sm:$0xff] %vm223_vm0, %v1134_v1  ;;  %259 = vst.msk [vmem:[#allocation2 + $0x110] sm:$0xff] %vm223_vm0, %v1134_v1  ;;  %v291_v30 = vld [vmem:[%s1275_s9 + $0x60] sm:$0xff]  ;;  %v292_v31 = vld [vmem:[%s1275_s9 + $0x68] sm:$0xff]  ;;  %p1071_p12 = pnand %p1070_p11, %p1206_p5  ;;  %s1075_s14 = scalar_lea.vmem %s1074_s13, 256 }
  0x20   : > { %261 = vst.msk [vmem:[#allocation2 + $0x120] sm:$0xff] %vm223_vm0, %v1134_v1  ;;  %262 = vst.msk [vmem:[#allocation2 + $0x128] sm:$0xff] %vm223_vm0, %v1134_v1  ;;  %v293_v32 = vld [vmem:[%s1275_s9 + $0x70] sm:$0xff]  ;;  %v294_v33 = vld [vmem:[%s1275_s9 + $0x78] sm:$0xff]  ;;  %p1077_p1 = scmp.lt.s32.totalorder %s1075_s14, %s1069_s12 }
  0x21   : > { %263 = vst.msk [vmem:[#allocation2 + $0x130] sm:$0x3] %vm226_vm1, %v1134_v1  ;;  %266 = vst.msk [vmem:[#allocation2 + $0x148] sm:$0x3] %vm226_vm1, %v1134_v1  ;;  %v295_v34 = vld [vmem:[%s1275_s9 + $0x80] sm:$0xff]  ;;  %v296_v35 = vld [vmem:[%s1275_s9 + $0x88] sm:$0xff]  ;;  %p1072_p13 = pneg %p1071_p12 }
  0x22   : > { %264 = vst.msk [vmem:[#allocation2 + $0x138] sm:$0xff] %vm223_vm0, %v1134_v1  ;;  %265 = vst.msk [vmem:[#allocation2 + $0x140] sm:$0xff] %vm223_vm0, %v1134_v1  ;;  %v297_v38 = vld [vmem:[%s1275_s9 + $0x90] sm:$0xff]  ;;  %v298_v39 = vld [vmem:[%s1275_s9 + $0x98] sm:$0xff]  ;;  %p1078_p2 = por %p1077_p1, %p1076_p0 }
  0x23   : > { %267 = vst.msk [vmem:[#allocation2 + $0x150] sm:$0xff] %vm223_vm0, %v1134_v1  ;;  %268 = vst.msk [vmem:[#allocation2 + $0x158] sm:$0xff] %vm223_vm0, %v1134_v1  ;;  %v299_v40 = vld [vmem:[%s1275_s9 + $0xa0] sm:$0xff] }
  0x24   : > { %269 = vst.msk [vmem:[#allocation2 + $0x160] sm:$0x3] %vm226_vm1, %v1134_v1  ;;  %272 = vst.msk [vmem:[#allocation2 + $0x178] sm:$0x3] %vm226_vm1, %v1134_v1  ;;  %p1079_p3 = pnand %p1078_p2, %p1072_p13 }
  0x25   : > { %270 = vst.msk [vmem:[#allocation2 + $0x168] sm:$0xff] %vm223_vm0, %v1134_v1  ;;  %271 = vst.msk [vmem:[#allocation2 + $0x170] sm:$0xff] %vm223_vm0, %v1134_v1 }
  0x26   : > { %273 = vst.msk [vmem:[#allocation2 + $0x180] sm:$0xff] %vm223_vm0, %v1134_v1  ;;  %274 = vst.msk [vmem:[#allocation2 + $0x188] sm:$0xff] %vm223_vm0, %v1134_v1 }
  0x27   : > { %275 = vst.msk [vmem:[#allocation2 + $0x190] sm:$0x3] %vm226_vm1, %v1134_v1  ;;  %vm1478_vm3 = vmpackc.low %vm223_vm0, %vm223_vm0 }
  0x28   : > { %312 = vst.msk [vmem:[#allocation2 + $0x19] sm:$0xff] %vm223_vm0, %v279_v6  ;;  %313 = vst.msk [vmem:[#allocation2 + $0x21] sm:$0xff] %vm223_vm0, %v280_v7 }
  0x29   : > { %314 = vst.msk [vmem:[#allocation2 + $0x31] sm:$0xff] %vm223_vm0, %v281_v8  ;;  %315 = vst.msk [vmem:[#allocation2 + $0x39] sm:$0xff] %vm223_vm0, %v282_v11 }
  0x2a   : > { %316 = vst.msk [vmem:[#allocation2 + $0x49] sm:$0xff] %vm223_vm0, %v283_v12  ;;  %317 = vst.msk [vmem:[#allocation2 + $0x51] sm:$0xff] %vm223_vm0, %v284_v13 }
  0x2b   : > { %318 = vst.msk [vmem:[#allocation2 + $0x61] sm:$0xff] %vm223_vm0, %v285_v14  ;;  %319 = vst.msk [vmem:[#allocation2 + $0x69] sm:$0xff] %vm223_vm0, %v286_v15 }
  0x2c   : > { %320 = vst.msk [vmem:[#allocation2 + $0x79] sm:$0xff] %vm223_vm0, %v287_v20  ;;  %321 = vst.msk [vmem:[#allocation2 + $0x81] sm:$0xff] %vm223_vm0, %v288_v24 }
  0x2d   : > { %322 = vst.msk [vmem:[#allocation2 + $0x91] sm:$0xff] %vm223_vm0, %v289_v25  ;;  %323 = vst.msk [vmem:[#allocation2 + $0x99] sm:$0xff] %vm223_vm0, %v290_v26 }
  0x2e   : > { %324 = vst.msk [vmem:[#allocation2 + $0xa9] sm:$0xff] %vm223_vm0, %v291_v30  ;;  %325 = vst.msk [vmem:[#allocation2 + $0xb1] sm:$0xff] %vm223_vm0, %v292_v31 }
  0x2f   : > { %326 = vst.msk [vmem:[#allocation2 + $0xc1] sm:$0xff] %vm223_vm0, %v293_v32  ;;  %327 = vst.msk [vmem:[#allocation2 + $0xc9] sm:$0xff] %vm223_vm0, %v294_v33  ;;  %v469_v41 = vld [vmem:[#allocation2 + $0x18] ss:$2 sm:$0xff]  ;;  %v509_v42 = vld [vmem:[#allocation2 + $0x19] ss:$2 sm:$0xff] }
  0x30   : > { %328 = vst.msk [vmem:[#allocation2 + $0xd9] sm:$0xff] %vm223_vm0, %v295_v34  ;;  %329 = vst.msk [vmem:[#allocation2 + $0xe1] sm:$0xff] %vm223_vm0, %v296_v35  ;;  %v549_v43 = vld [vmem:[#allocation2 + $0x1a] ss:$2 sm:$0xff]  ;;  %v392_v47 = vld [vmem:[#allocation2 + $0x31] ss:$2 sm:$0xff]  ;;  %v492_v50 = vmul.f32 %v1322_v22, %v469_v41  ;;  %v532_v51 = vmul.f32 %v1327_v23, %v509_v42 }
  0x31   : > { %330 = vst.msk [vmem:[#allocation2 + $0xf1] sm:$0xff] %vm223_vm0, %v297_v38  ;;  %331 = vst.msk [vmem:[#allocation2 + $0xf9] sm:$0xff] %vm223_vm0, %v298_v39  ;;  %v353_v46 = vld [vmem:[#allocation2 + $0x30] ss:$2 sm:$0xff]  ;;  %v414_v53 = vmul.f32 %v1285_v3, %v392_v47  ;;  %v511_v55 = vld [vmem:[#allocation2 + $0x49] ss:$2 sm:$0xff]  ;;  %v572_v57 = vmul.f32 %v1338_v29, %v549_v43 }
  0x32   : > { %332 = vst.msk [vmem:[#allocation2 + $0x109] sm:$0xff] %vm223_vm0, %v299_v40  ;;  %v432_v48 = vld [vmem:[#allocation2 + $0x32] ss:$2 sm:$0xff]  ;;  %v374_v52 = vmul.f32 %v1280_v2, %v353_v46  ;;  %v500_v60 = vadd.f32 %v492_v50, %v461_v49  ;;  %v533_v61 = vmul.f32 %v1327_v23, %v511_v55  ;;  %v629_v1 = vld [vmem:[#allocation2 + $0x31] ss:$2 sm:$0xff] }
  0x33   : > { %v471_v54 = vld [vmem:[#allocation2 + $0x48] ss:$2 sm:$0xff]  ;;  %v454_v58 = vmul.f32 %v1301_v10, %v432_v48  ;;  %v631_v8 = vld [vmem:[#allocation2 + $0x61] ss:$2 sm:$0xff]  ;;  %v652_v14 = vmul.f32 %v1366_v44, %v629_v1  ;;  %v473_v34 = vld [vmem:[#allocation2 + $0x78] ss:$2 sm:$0xff] }
  0x34   : > { %v551_v56 = vld [vmem:[#allocation2 + $0x4a] ss:$2 sm:$0xff]  ;;  %v493_v59 = vmul.f32 %v1322_v22, %v471_v54  ;;  %v382_v4 = vadd.f32 %v1296_v9, %v374_v52  ;;  %v540_v13 = vadd.f32 %v532_v51, %v500_v60  ;;  %v1394_v15 = vmul.f32 %v1366_v44, %v631_v8  ;;  %v394_v19 = vld [vmem:[#allocation2 + $0x61] ss:$2 sm:$0xff]  ;;  %v396_v25 = vld [vmem:[#allocation2 + $0x91] ss:$2 sm:$0xff] }
  0x35   : > { %v589_v62 = vld [vmem:[#allocation2 + $0x30] ss:$2 sm:$0xff]  ;;  %v591_v63 = vld [vmem:[#allocation2 + $0x60] ss:$2 sm:$0xff]  ;;  %v1386_v5 = vmul.f32 %v1338_v29, %v551_v56  ;;  %v415_v26 = vmul.f32 %v1285_v3, %v394_v19  ;;  %v416_v32 = vmul.f32 %v1285_v3, %v396_v25  ;;  %v513_v36 = vld [vmem:[#allocation2 + $0x79] ss:$2 sm:$0xff]  ;;  %v494_v48 = vmul.f32 %v1322_v22, %v473_v34 }
  0x36   : > { %v612_v6 = vmul.f32 %v1355_v37, %v589_v62  ;;  %v1390_v7 = vmul.f32 %v1355_v37, %v591_v63  ;;  %v669_v11 = vld [vmem:[#allocation2 + $0x32] ss:$2 sm:$0xff]  ;;  %v671_v12 = vld [vmem:[#allocation2 + $0x62] ss:$2 sm:$0xff]  ;;  %v422_v20 = vadd.f32 %v414_v53, %v382_v4  ;;  %v580_v30 = vadd.f32 %v572_v57, %v540_v13  ;;  %v515_v42 = vld [vmem:[#allocation2 + $0xa9] ss:$2 sm:$0xff] }
  0x37   : > { %v692_v16 = vmul.f32 %v1371_v45, %v669_v11  ;;  %v355_v17 = vld [vmem:[#allocation2 + $0x60] ss:$2 sm:$0xff]  ;;  %v357_v18 = vld [vmem:[#allocation2 + $0x90] ss:$2 sm:$0xff]  ;;  %v1401_v31 = vmul.f32 %v1371_v45, %v671_v12  ;;  %v534_v50 = vmul.f32 %v1327_v23, %v513_v36  ;;  %v633_v53 = vld [vmem:[#allocation2 + $0x91] ss:$2 sm:$0xff]  ;;  %v535_v57 = vmul.f32 %v1327_v23, %v515_v42 }
  0x38   : > { %v375_v21 = vmul.f32 %v1280_v2, %v355_v17  ;;  %v376_v24 = vmul.f32 %v1280_v2, %v357_v18  ;;  %v434_v27 = vld [vmem:[#allocation2 + $0x62] ss:$2 sm:$0xff]  ;;  %v436_v28 = vld [vmem:[#allocation2 + $0x92] ss:$2 sm:$0xff]  ;;  %v462_v38 = vadd.f32 %v454_v58, %v422_v20  ;;  %v620_v47 = vadd.f32 %v612_v6, %v580_v30  ;;  %v635_v58 = vld [vmem:[#allocation2 + $0xc1] ss:$2 sm:$0xff] }
  0x39   : > { %v455_v33 = vmul.f32 %v1301_v10, %v434_v27  ;;  %v475_v35 = vld [vmem:[#allocation2 + $0xa8] ss:$2 sm:$0xff]  ;;  %v456_v41 = vmul.f32 %v1301_v10, %v436_v28  ;;  %v302_v12 = vld [vmem:[%s1275_s9 + $0xb8] sm:$0xff]  ;;  %v398_v20 = vld [vmem:[#allocation2 + $0xc1] ss:$2 sm:$0xff] }
  0x3a   : > { %v383_v39 = vadd.f32 %v1296_v9, %v375_v21  ;;  %v384_v40 = vadd.f32 %v1296_v9, %v376_v24  ;;  %v553_v43 = vld [vmem:[#allocation2 + $0x7a] ss:$2 sm:$0xff]  ;;  %v555_v46 = vld [vmem:[#allocation2 + $0xaa] ss:$2 sm:$0xff]  ;;  %v495_v49 = vmul.f32 %v1322_v22, %v475_v35  ;;  %v501_v54 = vadd.f32 %v493_v59, %v462_v38  ;;  %335 = vst.msk [vmem:[#allocation2 + $0x129] sm:$0xff] %vm223_vm0, %v302_v12 }
  0x3b   : > { %v593_v51 = vld [vmem:[#allocation2 + $0x90] ss:$2 sm:$0xff]  ;;  %v595_v52 = vld [vmem:[#allocation2 + $0xc0] ss:$2 sm:$0xff]  ;;  %v660_v63 = vadd.f32 %v652_v14, %v620_v47  ;;  %v574_v1 = vmul.f32 %v1338_v29, %v553_v43  ;;  %v575_v4 = vmul.f32 %v1338_v29, %v555_v46  ;;  %v1427_v24 = vmul.f32 %v1366_v44, %v633_v53 }
  0x3c   : > { %v423_v55 = vadd.f32 %v415_v26, %v383_v39  ;;  %v424_v56 = vadd.f32 %v416_v32, %v384_v40  ;;  %v673_v60 = vld [vmem:[#allocation2 + $0x92] ss:$2 sm:$0xff]  ;;  %v675_v62 = vld [vmem:[#allocation2 + $0xc2] ss:$2 sm:$0xff]  ;;  %v1415_v6 = vmul.f32 %v1355_v37, %v593_v51  ;;  %v541_v13 = vadd.f32 %v533_v61, %v501_v54  ;;  %v400_v26 = vld [vmem:[#allocation2 + $0xf1] ss:$2 sm:$0xff] }
  0x3d   : > { %v300_v8 = vld [vmem:[%s1275_s9 + $0xa8] sm:$0xff]  ;;  %v301_v11 = vld [vmem:[%s1275_s9 + $0xb0] sm:$0xff]  ;;  %v615_v18 = vmul.f32 %v1355_v37, %v595_v52  ;;  %v1424_v21 = vadd.f32 %v692_v16, %v660_v63  ;;  %v1430_v61 = vmul.f32 %v1366_v44, %v635_v58  ;;  %v1433_v25 = vmul.f32 %v1371_v45, %v673_v60  ;;  %v477_v34 = vld [vmem:[#allocation2 + $0xd8] ss:$2 sm:$0xff] }
  0x3e   : > { %v463_v59 = vadd.f32 %v455_v33, %v423_v55  ;;  %v464_v17 = vadd.f32 %v456_v41, %v424_v56  ;;  %333 = vst.msk [vmem:[#allocation2 + $0x111] sm:$0xff] %vm223_vm0, %v300_v8  ;;  %334 = vst.msk [vmem:[#allocation2 + $0x121] sm:$0xff] %vm223_vm0, %v301_v11  ;;  %v359_v14 = vld [vmem:[#allocation2 + $0xc0] ss:$2 sm:$0xff]  ;;  %v361_v19 = vld [vmem:[#allocation2 + $0xf0] ss:$2 sm:$0xff]  ;;  %v581_v27 = vadd.f32 %v1386_v5, %v541_v13 }
  0x3f   : > { %v377_v32 = vmul.f32 %v1280_v2, %v359_v14  ;;  %v438_v16 = vld [vmem:[#allocation2 + $0xc2] ss:$2 sm:$0xff]  ;;  %v440_v33 = vld [vmem:[#allocation2 + $0xf2] ss:$2 sm:$0xff]  ;;  %v1438_v35 = vmul.f32 %v1371_v45, %v675_v62  ;;  %v378_v36 = vmul.f32 %v1280_v2, %v361_v19  ;;  %v417_v38 = vmul.f32 %v1285_v3, %v398_v20  ;;  %v517_v5 = vld [vmem:[#allocation2 + $0xd9] ss:$2 sm:$0xff] }
  0x40   : > { %v502_v28 = vadd.f32 %v494_v48, %v463_v59  ;;  %v503_v30 = vadd.f32 %v495_v49, %v464_v17  ;;  %v418_v39 = vmul.f32 %v1285_v3, %v400_v26  ;;  %v303_v40 = vld [vmem:[%s1275_s9 + $0xc0] sm:$0xff]  ;;  %v621_v41 = vadd.f32 %v1390_v7, %v581_v27  ;;  %v304_v48 = vld [vmem:[%s1275_s9 + $0xc8] sm:$0xff]  ;;  %v305_v49 = vld [vmem:[%s1275_s9 + $0xd0] sm:$0xff] }
  0x41   : > { %v385_v46 = vadd.f32 %v1296_v9, %v377_v32  ;;  %v557_v47 = vld [vmem:[#allocation2 + $0xda] ss:$2 sm:$0xff]  ;;  %336 = vst.msk [vmem:[#allocation2 + $0x139] sm:$0xff] %vm223_vm0, %v303_v40  ;;  %v386_v51 = vadd.f32 %v1296_v9, %v378_v36  ;;  %v457_v52 = vmul.f32 %v1301_v10, %v438_v16  ;;  %v458_v53 = vmul.f32 %v1301_v10, %v440_v33  ;;  %v309_v63 = vld [vmem:[%s1275_s9 + $0xf0] sm:$0xff] }
  0x42   : > { %v542_v42 = vadd.f32 %v534_v50, %v502_v28  ;;  %v543_v43 = vadd.f32 %v535_v57, %v503_v30  ;;  %v496_v54 = vmul.f32 %v1322_v22, %v477_v34  ;;  %v306_v7 = vld [vmem:[%s1275_s9 + $0xd8] sm:$0xff]  ;;  %v307_v50 = vld [vmem:[%s1275_s9 + $0xe0] sm:$0xff]  ;;  %v308_v55 = vld [vmem:[%s1275_s9 + $0xe8] sm:$0xff]  ;;  %337 = vst.msk [vmem:[#allocation2 + $0x141] sm:$0xff] %vm223_vm0, %v304_v48  ;;  %v661_v56 = vadd.f32 %v1394_v15, %v621_v41 }
  0x43   : > { %338 = vst.msk [vmem:[#allocation2 + $0x151] sm:$0xff] %vm223_vm0, %v305_v49  ;;  %v425_v60 = vadd.f32 %v417_v38, %v385_v46  ;;  %v597_v62 = vld [vmem:[#allocation2 + $0xf0] ss:$2 sm:$0xff]  ;;  %339 = vst.msk [vmem:[#allocation2 + $0x159] sm:$0xff] %vm223_vm0, %v306_v7  ;;  %v708_v11 = vmax.f32 %v1424_v21, 0.0  ;;  %v426_v12 = vadd.f32 %v418_v39, %v386_v51  ;;  %v536_v17 = vmul.f32 %v1327_v23, %v517_v5 }
  0x44   : > { %v582_v57 = vadd.f32 %v574_v1, %v542_v42  ;;  %v583_v58 = vadd.f32 %v575_v4, %v543_v43  ;;  %v310_v8 = vld [vmem:[%s1275_s9 + $0xf8] sm:$0xff]  ;;  %340 = vst.msk [vmem:[#allocation2 + $0x169] sm:$0xff] %vm223_vm0, %v307_v50  ;;  %341 = vst.msk [vmem:[#allocation2 + $0x171] sm:$0xff] %vm223_vm0, %v308_v55  ;;  %v576_v15 = vmul.f32 %v1338_v29, %v557_v47 }
  0x45   : > { %v479_v13 = vld [vmem:[#allocation2 + $0x108] ss:$2 sm:$0xff]  ;;  %v519_v59 = vld [vmem:[#allocation2 + $0x109] ss:$2 sm:$0xff]  ;;  %342 = vst.msk [vmem:[#allocation2 + $0x181] sm:$0xff] %vm223_vm0, %v309_v63  ;;  %343 = vst.msk [vmem:[#allocation2 + $0x189] sm:$0xff] %vm223_vm0, %v310_v8  ;;  %v701_v1 = vadd.f32 %v1401_v31, %v661_v56  ;;  %v465_v19 = vadd.f32 %v457_v52, %v425_v60  ;;  %v466_v27 = vadd.f32 %v458_v53, %v426_v12 }
  0x46   : > { %v622_v4 = vadd.f32 %v1415_v6, %v582_v57  ;;  %v623_v14 = vadd.f32 %v615_v18, %v583_v58  ;;  %v559_v20 = vld [vmem:[#allocation2 + $0x10a] ss:$2 sm:$0xff]  ;;  %v637_v21 = vld [vmem:[#allocation2 + $0xf1] ss:$2 sm:$0xff]  ;;  %v497_v28 = vmul.f32 %v1322_v22, %v479_v13  ;;  %v537_v30 = vmul.f32 %v1327_v23, %v519_v59  ;;  %v639_v6 = vld [vmem:[#allocation2 + $0x121] ss:$2 sm:$0xff] }
  0x47   : > { %v599_v26 = vld [vmem:[#allocation2 + $0x120] ss:$2 sm:$0xff]  ;;  %v616_v32 = vmul.f32 %v1355_v37, %v597_v62  ;;  %v709_v33 = vmax.f32 %v701_v1, 0.0  ;;  %v504_v36 = vadd.f32 %v496_v54, %v465_v19  ;;  %v577_v5 = vmul.f32 %v1338_v29, %v559_v20  ;;  %v402_v47 = vld [vmem:[#allocation2 + $0x121] ss:$2 sm:$0xff] }
  0x48   : > { %v677_v16 = vld [vmem:[#allocation2 + $0xf2] ss:$2 sm:$0xff]  ;;  %v662_v34 = vadd.f32 %v1427_v24, %v622_v4  ;;  %v663_v31 = vadd.f32 %v1430_v61, %v623_v14  ;;  %v505_v39 = vadd.f32 %v497_v28, %v466_v27  ;;  %v617_v40 = vmul.f32 %v1355_v37, %v599_v26  ;;  %v679_v46 = vld [vmem:[#allocation2 + $0x122] ss:$2 sm:$0xff] }
  0x49   : > { %v363_v18 = vld [vmem:[#allocation2 + $0x120] ss:$2 sm:$0xff]  ;;  %v656_v41 = vmul.f32 %v1366_v44, %v637_v21  ;;  %v1010_v42 = vpack.c.bf16 %v709_v33, %v708_v11  ;;  %v544_v43 = vadd.f32 %v536_v17, %v504_v36  ;;  %v657_v49 = vmul.f32 %v1366_v44, %v639_v6 }
  0x4a   : > { %v702_v24 = vadd.f32 %v1433_v25, %v662_v34  ;;  %v703_v61 = vadd.f32 %v1438_v35, %v663_v31  ;;  %v545_v48 = vadd.f32 %v537_v30, %v505_v39  ;;  %v696_v51 = vmul.f32 %v1371_v45, %v677_v16  ;;  %v365_v52 = vld [vmem:[#allocation2 + $0x150] ss:$2 sm:$0xff]  ;;  %v404_v54 = vld [vmem:[#allocation2 + $0x151] ss:$2 sm:$0xff] }
  0x4b   : > { %v379_v53 = vmul.f32 %v1280_v2, %v363_v18  ;;  %v442_v7 = vld [vmem:[#allocation2 + $0x122] ss:$2 sm:$0xff]  ;;  %1012 = vmatpush3.bf16.xpose.msk.msra.mxu0 %vm1478_vm3, %v1010_v42  ;;  %v584_v55 = vadd.f32 %v576_v15, %v544_v43  ;;  %v380_v35 = vmul.f32 %v1280_v2, %v365_v52  ;;  %v444_v56 = vld [vmem:[#allocation2 + $0x152] ss:$2 sm:$0xff]  ;;  %v419_v62 = vmul.f32 %v1285_v3, %v402_v47  ;;  %v521_v2 = vld [vmem:[#allocation2 + $0x139] ss:$2 sm:$0xff] }
  0x4c   : > { %v710_v50 = vmax.f32 %v702_v24, 0.0  ;;  %v711_v25 = vmax.f32 %v703_v61, 0.0  ;;  %v481_v57 = vld [vmem:[#allocation2 + $0x138] ss:$2 sm:$0xff]  ;;  %1013 = vmatprep.subr.bf16.mxu0 %v1133_v0  ;;  %v585_v58 = vadd.f32 %v577_v5, %v545_v48  ;;  %v420_v63 = vmul.f32 %v1285_v3, %v404_v54  ;;  %v483_v8 = vld [vmem:[#allocation2 + $0x168] ss:$2 sm:$0xff] }
  0x4d   : > { %v387_v60 = vadd.f32 %v1296_v9, %v379_v53  ;;  %v624_v11 = vadd.f32 %v616_v32, %v584_v55  ;;  %v697_v12 = vmul.f32 %v1371_v45, %v679_v46  ;;  %v388_v13 = vadd.f32 %v1296_v9, %v380_v35  ;;  %v523_v14 = vld [vmem:[#allocation2 + $0x169] ss:$2 sm:$0xff]  ;;  %v561_v21 = vld [vmem:[#allocation2 + $0x13a] ss:$2 sm:$0xff]  ;;  %v563_v30 = vld [vmem:[#allocation2 + $0x16a] ss:$2 sm:$0xff] }
  0x4e   : > { %v459_v59 = vmul.f32 %v1301_v10, %v442_v7  ;;  %v625_v17 = vadd.f32 %v617_v40, %v585_v58  ;;  %v460_v1 = vmul.f32 %v1301_v10, %v444_v56  ;;  %v498_v4 = vmul.f32 %v1322_v22, %v481_v57  ;;  %v601_v34 = vld [vmem:[#allocation2 + $0x150] ss:$2 sm:$0xff]  ;;  %v603_v6 = vld [vmem:[#allocation2 + $0x180] ss:$2 sm:$0xff]  ;;  %v641_v5 = vld [vmem:[#allocation2 + $0x151] ss:$2 sm:$0xff] }
  0x4f   : > { %v427_v15 = vadd.f32 %v419_v62, %v387_v60  ;;  %v1014_v19 = vpack.c.bf16 %v711_v25, %v710_v50  ;;  %v664_v20 = vadd.f32 %v656_v41, %v624_v11  ;;  %v428_v26 = vadd.f32 %v420_v63, %v388_v13  ;;  %v643_v42 = vld [vmem:[#allocation2 + $0x181] ss:$2 sm:$0xff]  ;;  %v681_v43 = vld [vmem:[#allocation2 + $0x152] ss:$2 sm:$0xff]  ;;  %v683_v48 = vld [vmem:[#allocation2 + $0x182] ss:$2 sm:$0xff] }
  0x50   : > { %v499_v3 = vmul.f32 %v1322_v22, %v483_v8  ;;  %v665_v27 = vadd.f32 %v657_v49, %v625_v17  ;;  %v538_v9 = vmul.f32 %v1327_v23, %v521_v2  ;;  %v539_v33 = vmul.f32 %v1327_v23, %v523_v14 }
  0x51   : > { %v467_v28 = vadd.f32 %v459_v59, %v427_v15  ;;  %v704_v32 = vadd.f32 %v696_v51, %v664_v20  ;;  %v468_v16 = vadd.f32 %v460_v1, %v428_v26  ;;  %v578_v36 = vmul.f32 %v1338_v29, %v561_v21 }
  0x52   : > { %v705_v10 = vadd.f32 %v697_v12, %v665_v27  ;;  %v579_v39 = vmul.f32 %v1338_v29, %v563_v30  ;;  %v618_v23 = vmul.f32 %v1355_v37, %v601_v34  ;;  %v619_v61 = vmul.f32 %v1355_v37, %v603_v6 }
  0x53   : > { %v506_v31 = vadd.f32 %v498_v4, %v467_v28  ;;  %1016 = vmatpush3.bf16.xpose.msk.msra.mxu0 %vm1478_vm3, %v1014_v19  ;;  %v712_v22 = vmax.f32 %v704_v32, 0.0  ;;  %v507_v18 = vadd.f32 %v499_v3, %v468_v16  ;;  %v658_v47 = vmul.f32 %v1366_v44, %v641_v5 }
  0x54   : > { %1017 = vmatprep.subr.bf16.mxu0 %v1133_v0  ;;  %v713_v40 = vmax.f32 %v705_v10, 0.0  ;;  %v659_v29 = vmul.f32 %v1366_v44, %v643_v42  ;;  %v698_v53 = vmul.f32 %v1371_v45, %v681_v43  ;;  %v699_v7 = vmul.f32 %v1371_v45, %v683_v48  ;;  %v716_v45 = vld [vmem:[%s1574_s2] sm:$0xff] }
  0x55   : > { %v546_v41 = vadd.f32 %v538_v9, %v506_v31  ;;  %v547_v24 = vadd.f32 %v539_v33, %v507_v18 }
  0x56   : > { %v1018_v49 = vpack.c.bf16 %v713_v40, %v712_v22 }
  0x57   : > { %v586_v46 = vadd.f32 %v578_v36, %v546_v41  ;;  %v587_v51 = vadd.f32 %v579_v39, %v547_v24 }
  0x59   : > { %v626_v52 = vadd.f32 %v618_v23, %v586_v46  ;;  %v627_v54 = vadd.f32 %v619_v61, %v587_v51 }
  0x5b   : > { %v666_v50 = vadd.f32 %v658_v47, %v626_v52  ;;  %1020 = vmatpush3.bf16.xpose.msk.msra.mxu0 %vm1478_vm3, %v1018_v49  ;;  %v667_v37 = vadd.f32 %v659_v29, %v627_v54 }
  0x5c   : > { %1021 = vmatprep.subr.bf16.mxu0 %v1133_v0 }
  0x5d   : > { %v706_v25 = vadd.f32 %v698_v53, %v666_v50  ;;  %v707_v55 = vadd.f32 %v699_v7, %v667_v37 }
  0x5f   : > { %v714_v35 = vmax.f32 %v706_v25, 0.0  ;;  %v715_v56 = vmax.f32 %v707_v55, 0.0 }
  0x61   : > { %v1022_v44 = vpack.c.bf16 %v715_v56, %v714_v35 }
  0x63   : > { %1024 = vmatpush3.bf16.xpose.msk.msra.mxu0 %vm1478_vm3, %v1022_v44 }
  0x6a   : > { %1007 = vmatmul.mubr.msk.f32.vlgmr.msra.gmra.mrb[0].mxu0 %vm223_vm0, %v716_v45 }
  0x91   : > { %v721_v57 = vpop.permute.xlu0 %720 }
 0x13d   : > { %v816_v58 = vpop.f32.mrb[0].mxu0 }
 0x13e   : > { %v817_v0 = vadd.f32 %v816_v58, %v721_v57  ;;  %v1008_v60 = vpop.f32.mrb[1].mxu0 }
 0x140   : > { %v820_v62 = vmax.f32 %v817_v0, 0.0 }
 0x142   : > { %822 = vst.msk [vmem:[%s217_s30] sm:$0xff] %vm821_vm4, %v820_v62 }
 0x143   : > { %1082 = shalt.err (!%p1079_p3)
}
 0x144   : > { %s1083_s15 = scalar_lea.hbm %s1530_s10, 128  ;;  %s1087_s17 = scalar_lea.hbm %s1577_s5, 256 }
 0x145   : > { %p1084_p4 = scmp.ne.s32.totalorder %s1530_s10, %s1083_s15  ;;  %p1088_p9 = scmp.lt.u32.totalorder %s1530_s10, %s1577_s5 }
 0x146   : > { %p1089_p10 = scmp.lt.u32.totalorder %s1087_s17, %s1083_s15  ;;  %p1091_p12 = scmp.lt.u32.totalorder %s1083_s15, %s1530_s10 }
 0x147   : > { %p1085_p7 = pnand %p1084_p4, %p1206_p5 }
 0x148   : > { %p1090_p11 = por %p1089_p10, %p1088_p9 }
 0x149   : > { %p1086_p8 = pneg %p1085_p7 }
 0x14a   : > { %p1092_p13 = por %p1091_p12, %p1090_p11 }
 0x14c   : > { %p1093_p0 = pnand %p1092_p13, %p1086_p8 }
 0x14e   : > { %1096 = shalt.err (!%p1093_p0)
}
 0x14f   : > { %1025 = dma.vmem_to_hbm [thread:$0]  (%p1206_p5), %s1532_s6, 128, %s1530_s10, %s824_s11  }
 0x150 PF: > { %p1031_p1 = scmp.ge.s32.totalorder %s1131_s21, 2  ;;  %s849_s26 = sand.u32 1, %s1119_s18  }
 0x151   : > { %s850_s30 = scalar_lea.sflag [#allocation4], %s849_s26 }
 0x152   : > { %p1028_p2 = pnand %p1031_p1, %p1210_p6 }
 0x154   : > { %1114 = dma.done.wait (!%p1028_p2), %s850_s30, 128  }
 0x155   : > { %1116 = vsyncadd (!%p1028_p2), %s850_s30, 4294967168  ;;  %p15_p3 = scmp.ge.s32.totalorder %s1193_s24, 4   ;;  %s1582_s18 = smov %s1123_s19 }
 0x156   : > { %s1583_s19 = smov %s1127_s20  ;;  %s1584_s20 = smov %s1204_s27 }
 0x157   : > { %s1585_s21 = smov %s1193_s24  ;;  %17 = sbr.rel (!%p15_p3) target bundleno = 3 (0x3), region = 154 }
 0x15e   :  { %855 = vsyncpa [#allocation4], 1 }
 0x15f   :  { %857 = vsyncpa [#allocation4 + $0x1], 1 }

</bundles_post_ra>
